<compile_context>
chip_gen: v7x
topology: tpu7x:2x2x1
jax: 0.10.0
libtpu: 0.0.40
codegen_flags: <defaults>
</compile_context>

<pallas_src>
import functools

import jax
import jax.numpy as jnp
from jax.experimental import pallas as pl
from jax.experimental.pallas import tpu as pltpu

# ---- module constants (from the PyTorch spec) --------------------------------
N_EMBD = 384          # n_embd
BLOCK_SIZE = 256      # block_size (causal window upper bound)
HEAD_SIZE = 64        # head_size passed to Head(head_size)
DTYPE = jnp.float32

# ---- small test shapes --------------------------------------------------------
BATCH = 2
SEQ = 128             # T <= block_size


# ------------------------------ fused Pallas kernel ----------------------------
def _head_kernel(x_ref, wqkv_ref, o_ref, *, head_size):
    """One (batch) slab: QKV projection + causal softmax attention + P@V."""
    x = x_ref[0].astype(jnp.float32)                         # (T, C)
    w = wqkv_ref[...].astype(jnp.float32)                    # (C, 3*hs)

    # fused Q|K|V projection: one lane-dense MXU matmul (T, C) @ (C, 3*hs)
    qkv = jnp.dot(x, w, preferred_element_type=jnp.float32)  # (T, 3*hs)
    q = qkv[:, :head_size]
    k = qkv[:, head_size:2 * head_size]
    v = qkv[:, 2 * head_size:]

    # scaled scores + causal mask (tril)
    scale = float(head_size) ** -0.5
    wei = jnp.dot(q, k.T, preferred_element_type=jnp.float32) * scale   # (T, T)
    T = wei.shape[0]
    row = jax.lax.broadcasted_iota(jnp.int32, (T, T), 0)
    col = jax.lax.broadcasted_iota(jnp.int32, (T, T), 1)
    wei = jnp.where(col <= row, wei, -jnp.inf)

    # numerically-stable softmax (exact reciprocal for parity with the reference)
    m = jnp.max(wei, axis=-1, keepdims=True)
    e = jnp.exp(wei - m)
    s = jnp.sum(e, axis=-1, keepdims=True)
    p = e * pl.reciprocal(s, approx=False)
    # TODO(synk): dropout on p skipped (identity / eval mode).

    out = jnp.dot(p, v, preferred_element_type=jnp.float32)  # (T, hs)
    o_ref[0] = out.astype(o_ref.dtype)


def head_forward(x, w_key, w_query, w_value):
    """Pallas Head forward.

    x:        (B, T, C)
    w_*:      PyTorch nn.Linear layout (head_size, n_embd), bias=False
    returns:  (B, T, head_size)
    """
    B, T, C = x.shape
    hs = w_key.shape[0]
    # single fused QKV weight, stored (C, 3*hs); order = [q | k | v]
    wqkv = jnp.concatenate([w_query.T, w_key.T, w_value.T], axis=1)

    kernel = functools.partial(_head_kernel, head_size=hs)
    return pl.pallas_call(
        kernel,
        out_shape=jax.ShapeDtypeStruct((B, T, hs), x.dtype),
        grid=(B,),
        in_specs=[pl.BlockSpec((1, T, C), lambda b: (b, 0, 0)),
                  pl.BlockSpec((C, 3 * hs), lambda b: (0, 0))],
        out_specs=pl.BlockSpec((1, T, hs), lambda b: (b, 0, 0)),
        compiler_params=pltpu.CompilerParams(
            dimension_semantics=("parallel",)),
    )(x, wqkv)


# ------------------------------ pure-JAX reference -----------------------------
def head_reference(x, w_key, w_query, w_value):
    hp = jax.lax.Precision.HIGHEST
    hs = w_key.shape[0]
    k = jnp.einsum("btc,hc->bth", x, w_key, precision=hp)
    q = jnp.einsum("btc,hc->bth", x, w_query, precision=hp)
    v = jnp.einsum("btc,hc->bth", x, w_value, precision=hp)
    wei = jnp.einsum("bqh,bkh->bqk", q, k, precision=hp) * float(hs) ** -0.5
    T = x.shape[1]
    mask = jnp.tril(jnp.ones((T, T), dtype=bool))
    wei = jnp.where(mask[None], wei, -jnp.inf)
    p = jax.nn.softmax(wei, axis=-1)
    return jnp.einsum("bqk,bkh->bqh", p, v, precision=hp)


# ------------------------------------ main --------------------------------------
if __name__ == "__main__":
    key = jax.random.PRNGKey(0)
    kx, kk, kq, kv = jax.random.split(key, 4)

    x = jax.random.normal(kx, (BATCH, SEQ, N_EMBD), dtype=DTYPE)
    wscale = float(N_EMBD) ** -0.5
    w_key = (wscale * jax.random.normal(kk, (HEAD_SIZE, N_EMBD))).astype(DTYPE)
    w_query = (wscale * jax.random.normal(kq, (HEAD_SIZE, N_EMBD))).astype(DTYPE)
    w_value = (wscale * jax.random.normal(kv, (HEAD_SIZE, N_EMBD))).astype(DTYPE)

    out = jax.jit(head_forward)(x, w_key, w_query, w_value)
    jax.block_until_ready(out)

    assert out.shape == (BATCH, SEQ, HEAD_SIZE)
    assert bool(jnp.all(jnp.isfinite(out)))

    ref = head_reference(x, w_key, w_query, w_value)
    max_err = float(jnp.max(jnp.abs(out - ref)))
    assert max_err < 1e-3, f"max abs err vs reference: {max_err}"

    print("KERNEL_OK")
</pallas_src>

<mosaic_0001>
module attributes {stable_mosaic.version = 11 : i64} {
  func.func @_head_kernel(%arg0: i32, %arg1: memref<1x128x384xf32, #tpu.memory_space<vmem>>, %arg2: memref<384x192xf32, #tpu.memory_space<vmem>>, %arg3: memref<1x128x64xf32, #tpu.memory_space<vmem>>) attributes {dimension_semantics = [#tpu.dimension_semantics<parallel>], iteration_bounds = array<i64: 2>, scalar_prefetch = 0 : i64, scratch_operands = 0 : i64, tpu.core_type = #tpu.core_type<tc>, window_params = [{transform_indices = @transform_0, window_bounds = array<i64: 1, 128, 384>}, {pipeline_mode = #tpu.pipeline_mode<synchronous>, transform_indices = @transform_1, window_bounds = array<i64: 384, 192>}, {transform_indices = @transform_2, window_bounds = array<i64: 1, 128, 64>}]} {
    %c0 = arith.constant 0 : index
    %c0_0 = arith.constant 0 : index
    %c0_1 = arith.constant 0 : index
    %0 = vector.load %arg1[%c0, %c0_0, %c0_1] : memref<1x128x384xf32, #tpu.memory_space<vmem>>, vector<1x128x384xf32>
    %1 = vector.shape_cast %0 : vector<1x128x384xf32> to vector<128x384xf32>
    %c0_2 = arith.constant 0 : index
    %c0_3 = arith.constant 0 : index
    %2 = vector.load %arg2[%c0_2, %c0_3] : memref<384x192xf32, #tpu.memory_space<vmem>>, vector<384x192xf32>
    %cst = arith.constant dense<0.000000e+00> : vector<128x192xf32>
    %3 = tpu.matmul %1, %2, %cst {dimension_numbers = #tpu.dot_dimension_numbers<[1], [0], [0], [1], [0, 0, 1, 1], [], []>} : vector<128x384xf32>, vector<384x192xf32>, vector<128x192xf32> -> vector<128x192xf32>
    %4 = vector.extract_strided_slice %3 {offsets = [0, 0], sizes = [128, 64], strides = [1, 1]} : vector<128x192xf32> to vector<128x64xf32>
    %5 = vector.extract_strided_slice %3 {offsets = [0, 64], sizes = [128, 64], strides = [1, 1]} : vector<128x192xf32> to vector<128x64xf32>
    %6 = vector.extract_strided_slice %3 {offsets = [0, 128], sizes = [128, 64], strides = [1, 1]} : vector<128x192xf32> to vector<128x64xf32>
    %7 = tpu.transpose %5, [1, 0] : vector<128x64xf32> -> vector<64x128xf32>
    %cst_4 = arith.constant dense<0.000000e+00> : vector<128x128xf32>
    %8 = tpu.matmul %4, %7, %cst_4 {dimension_numbers = #tpu.dot_dimension_numbers<[1], [0], [0], [1], [0, 0, 1, 1], [], []>} : vector<128x64xf32>, vector<64x128xf32>, vector<128x128xf32> -> vector<128x128xf32>
    %cst_5 = arith.constant 1.250000e-01 : f32
    %9 = vector.broadcast %cst_5 : f32 to vector<128x128xf32>
    %10 = arith.mulf %8, %9 : vector<128x128xf32>
    %11 = tpu.iota {dimensions = array<i32: 0>} : vector<128x128xi32>
    %12 = tpu.iota {dimensions = array<i32: 1>} : vector<128x128xi32>
    %13 = arith.cmpi sle, %12, %11 : vector<128x128xi32>
    %cst_6 = arith.constant 0xFF800000 : f32
    %14 = vector.broadcast %cst_6 : f32 to vector<128x128xf32>
    %15 = arith.select %13, %10, %14 : vector<128x128xi1>, vector<128x128xf32>
    %cst_7 = arith.constant dense<0xFF800000> : vector<128xf32>
    %16 = vector.multi_reduction <maximumf>, %15, %cst_7 [1] : vector<128x128xf32> to vector<128xf32>
    %17 = vector.shape_cast %16 : vector<128xf32> to vector<128x1xf32>
    %18 = vector.broadcast %17 : vector<128x1xf32> to vector<128x128xf32>
    %19 = arith.subf %15, %18 : vector<128x128xf32>
    %20 = math.exp %19 : vector<128x128xf32>
    %cst_8 = arith.constant dense<0.000000e+00> : vector<128xf32>
    %21 = vector.multi_reduction <add>, %20, %cst_8 [1] : vector<128x128xf32> to vector<128xf32>
    %22 = vector.shape_cast %21 : vector<128xf32> to vector<128x1xf32>
    %23 = tpu.reciprocal %22 : vector<128x1xf32> -> vector<128x1xf32>
    %24 = vector.broadcast %23 : vector<128x1xf32> to vector<128x128xf32>
    %25 = arith.mulf %20, %24 : vector<128x128xf32>
    %cst_9 = arith.constant dense<0.000000e+00> : vector<128x64xf32>
    %26 = tpu.matmul %25, %6, %cst_9 {dimension_numbers = #tpu.dot_dimension_numbers<[1], [0], [0], [1], [0, 0, 1, 1], [], []>} : vector<128x128xf32>, vector<128x64xf32>, vector<128x64xf32> -> vector<128x64xf32>
    %c0_10 = arith.constant 0 : index
    %c0_11 = arith.constant 0 : index
    %c0_12 = arith.constant 0 : index
    %27 = vector.load %arg3[%c0_10, %c0_11, %c0_12] : memref<1x128x64xf32, #tpu.memory_space<vmem>>, vector<1x128x64xf32>
    %28 = vector.shape_cast %27 : vector<1x128x64xf32> to vector<128x64xf32>
    %29 = vector.shape_cast %26 : vector<128x64xf32> to vector<1x128x64xf32>
    tpu.vector_store %arg3[%c0_10, %c0_11, %c0_12], %29 {strides = array<i32>} : memref<1x128x64xf32, #tpu.memory_space<vmem>>, vector<1x128x64xf32>,
    return
  }
  func.func @transform_0(%arg0: i32) -> (i32, i32, i32) {
    %c0_i32 = arith.constant 0 : i32
    %c0_i32_0 = arith.constant 0 : i32
    %c0_i32_1 = arith.constant 0 : i32
    return %arg0, %c0_i32, %c0_i32_0 : i32, i32, i32
  }
  func.func @transform_1(%arg0: i32) -> (i32, i32) {
    %c0_i32 = arith.constant 0 : i32
    %c0_i32_0 = arith.constant 0 : i32
    %c0_i32_1 = arith.constant 0 : i32
    return %c0_i32, %c0_i32_0 : i32, i32
  }
  func.func @transform_2(%arg0: i32) -> (i32, i32, i32) {
    %c0_i32 = arith.constant 0 : i32
    %c0_i32_0 = arith.constant 0 : i32
    %c0_i32_1 = arith.constant 0 : i32
    return %arg0, %c0_i32, %c0_i32_0 : i32, i32, i32
  }
}

</mosaic_0001>

<bundles_post_ra>
// kernel: head_forward.1
= control target key start
LH: loop header
LB: loop body
LE: loop exit
PB: predicated region body
PF: predicated region fallthrough
CT: control target
= control target key end

     0   :  { %s1878_s9 = smov 0   ;;  %s2631_s0 = inlined_call_operand.vmem [shape: f32[2,128,384], index: 0, kind: input, shape index: {}]   ;;  %s2632_s1 = inlined_call_operand.vmem [shape: f32[384,192], index: 1, kind: input, shape index: {}]   ;;  %s2633_s2 = inlined_call_operand.vmem [shape: f32[2,128,64], index: 2, kind: output, shape index: {}]  }
   0x1 LB: > { %s1295_s10 = sadd.s32 4294967295, %s1859_s9   ;;  %p1299_p0 = scmp.ge.s32.totalorder %s1859_s9, 1  ;;  %s1859_s9 = sphi %s1878_s9, %s12_s9  }
   0x2   : > { %p112_p1 = scmp.lt.s32.totalorder %s1859_s9, 3 }
   0x4   : > { %p113_p2 = pnand %p1299_p0, %p112_p1 }
   0x5   : > { %v193_v0 = vld [vmem:[%s2632_s1 + $0x8] sm:$0xff] (!%p113_p2)  ;;  %v195_v1 = vld [vmem:[%s2632_s1 + $0x18] sm:$0xff] (!%p113_p2)  ;;  %v192_v2 = vld [vmem:[%s2632_s1] sm:$0xff] (!%p113_p2)  ;;  %v1861_v7 = vmov (!%p113_p2), 0.0   ;;  %p1997_p3 = scmp.lt.s32.totalorder (!%p113_p2), %s1295_s10, 1  ;;  %vm658_vm0 = vcmask (!%p113_p2), 523264  }
   0x6   : > { %116 = sbr.rel (%p113_p2) target bundleno = 1260 (0x4ec), region = 28  ;;  %v1514_v3 = vpack.c.bf16 (!%p113_p2), %v195_v1, %v193_v0  ;;  %v194_v4 = vld [vmem:[%s2632_s1 + $0x10] sm:$0xff] (!%p113_p2)  ;;  %v197_v5 = vld [vmem:[%s2632_s1 + $0x28] sm:$0xff] (!%p113_p2)  ;;  %v199_v6 = vld [vmem:[%s2632_s1 + $0x38] sm:$0xff] (!%p113_p2)  ;;  %513 = vmatprep.mubr.f32.mxu1 (!%p113_p2), %v1861_v7 }
   0x7   : > { %v1516_v8 = vpack.c.bf16 (!%p113_p2), %v194_v4, %v192_v2  ;;  %v1518_v9 = vpack.c.bf16 (!%p113_p2), %v199_v6, %v197_v5  ;;  %v196_v10 = vld [vmem:[%s2632_s1 + $0x20] sm:$0xff] (!%p113_p2)  ;;  %v198_v11 = vld [vmem:[%s2632_s1 + $0x30] sm:$0xff] (!%p113_p2)  ;;  %v201_v12 = vld [vmem:[%s2632_s1 + $0x48] sm:$0xff] (!%p113_p2) }
   0x8   : > { %1515 = vmatprep.subr.bf16.mxu0 (!%p113_p2), %v1514_v3  ;;  %v203_v13 = vld [vmem:[%s2632_s1 + $0x58] sm:$0xff] (!%p113_p2)  ;;  %v1520_v14 = vpack.c.bf16 (!%p113_p2), %v198_v11, %v196_v10  ;;  %v200_v16 = vld [vmem:[%s2632_s1 + $0x40] sm:$0xff] (!%p113_p2)  ;;  %v202_v17 = vld [vmem:[%s2632_s1 + $0x50] sm:$0xff] (!%p113_p2) }
   0x9   : > { %1517 = vmatpush1.bf16.msra.mxu0 (!%p113_p2), %v1516_v8  ;;  %v1522_v15 = vpack.c.bf16 (!%p113_p2), %v203_v13, %v201_v12  ;;  %v205_v18 = vld [vmem:[%s2632_s1 + $0x68] sm:$0xff] (!%p113_p2)  ;;  %v207_v19 = vld [vmem:[%s2632_s1 + $0x78] sm:$0xff] (!%p113_p2)  ;;  %v1524_v20 = vpack.c.bf16 (!%p113_p2), %v202_v17, %v200_v16  ;;  %v204_v22 = vld [vmem:[%s2632_s1 + $0x60] sm:$0xff] (!%p113_p2) }
   0xa   : > { %1519 = vmatprep.subr.bf16.mxu0 (!%p113_p2), %v1518_v9  ;;  %v1526_v21 = vpack.c.bf16 (!%p113_p2), %v207_v19, %v205_v18  ;;  %v206_v23 = vld [vmem:[%s2632_s1 + $0x70] sm:$0xff] (!%p113_p2)  ;;  %v209_v24 = vld [vmem:[%s2632_s1 + $0x88] sm:$0xff] (!%p113_p2)  ;;  %v211_v25 = vld [vmem:[%s2632_s1 + $0x98] sm:$0xff] (!%p113_p2) }
   0xb   : > { %v257_v26 = vld [vmem:[%s2632_s1 + $0x208] sm:$0xff] (!%p113_p2)  ;;  %v259_v27 = vld [vmem:[%s2632_s1 + $0x218] sm:$0xff] (!%p113_p2)  ;;  %v1528_v28 = vpack.c.bf16 (!%p113_p2), %v206_v23, %v204_v22  ;;  %v208_v29 = vld [vmem:[%s2632_s1 + $0x80] sm:$0xff] (!%p113_p2)  ;;  %v1530_v33 = vpack.c.bf16 (!%p113_p2), %v211_v25, %v209_v24 }
   0xc   : > { %v1578_v30 = vpack.c.bf16 (!%p113_p2), %v259_v27, %v257_v26  ;;  %v256_v31 = vld [vmem:[%s2632_s1 + $0x200] sm:$0xff] (!%p113_p2)  ;;  %v258_v32 = vld [vmem:[%s2632_s1 + $0x210] sm:$0xff] (!%p113_p2)  ;;  %v261_v36 = vld [vmem:[%s2632_s1 + $0x228] sm:$0xff] (!%p113_p2) }
   0xd   : > { %1521 = vmatpush1.bf16.msra.mxu0 %v1520_v14  ;;  %v210_v34 = vld [vmem:[%s2632_s1 + $0x90] sm:$0xff]  ;;  %v1580_v35 = vpack.c.bf16 %v258_v32, %v256_v31  ;;  %v263_v37 = vld [vmem:[%s2632_s1 + $0x238] sm:$0xff]  ;;  %v213_v38 = vld [vmem:[%s2632_s1 + $0xa8] sm:$0xff]  ;;  %s2638_s10 = smov (!%p1997_p3, %s1295_s10), 1 }
   0xe   : > { %1523 = vmatprep.subr.bf16.mxu0 %v1522_v15  ;;  %v215_v39 = vld [vmem:[%s2632_s1 + $0xb8] sm:$0xff]  ;;  %1579 = vmatprep.subr.bf16.mxu1 %v1578_v30  ;;  %v1582_v40 = vpack.c.bf16 %v263_v37, %v261_v36  ;;  %v260_v41 = vld [vmem:[%s2632_s1 + $0x220] sm:$0xff]  ;;  %v262_v42 = vld [vmem:[%s2632_s1 + $0x230] sm:$0xff]  ;;  %v1532_v43 = vpack.c.bf16 %v210_v34, %v208_v29  ;;  %s1738_s16 = smul.u32 384, %s2638_s10  ;;  %s1337_s28 = sshll.u32 %s2638_s10, 7 }
   0xf   : > { %1581 = vmatpush1.bf16.msra.mxu1 %v1580_v35  ;;  %v212_v44 = vld [vmem:[%s2632_s1 + $0xa0] sm:$0xff]  ;;  %v1584_v45 = vpack.c.bf16 %v262_v42, %v260_v41  ;;  %v265_v46 = vld [vmem:[%s2632_s1 + $0x248] sm:$0xff]  ;;  %v267_v47 = vld [vmem:[%s2632_s1 + $0x258] sm:$0xff]  ;;  %v1534_v48 = vpack.c.bf16 %v215_v39, %v213_v38  ;;  %s2594_s4 = scalar_lea.vmem %s2633_s2, %s1337_s28 }
  0x10   : > { %1583 = vmatprep.subr.bf16.mxu1 %v1582_v40  ;;  %v214_v49 = vld [vmem:[%s2632_s1 + $0xb0] sm:$0xff]  ;;  %v1586_v50 = vpack.c.bf16 %v267_v47, %v265_v46  ;;  %v264_v51 = vld [vmem:[%s2632_s1 + $0x240] sm:$0xff]  ;;  %v217_v53 = vld [vmem:[%s2632_s1 + $0xc8] sm:$0xff]  ;;  %s2089_s7 = scalar_lea.vmem %s2631_s0, %s1738_s16 }
  0x11   : > { %1525 = vmatpush1.bf16.msra.mxu0 %v1524_v20  ;;  %v266_v52 = vld [vmem:[%s2632_s1 + $0x250] sm:$0xff]  ;;  %v219_v54 = vld [vmem:[%s2632_s1 + $0xd8] sm:$0xff]  ;;  %v269_v55 = vld [vmem:[%s2632_s1 + $0x268] sm:$0xff]  ;;  %v1536_v58 = vpack.c.bf16 %v214_v49, %v212_v44 }
  0x12   : > { %1527 = vmatprep.subr.bf16.mxu0 %v1526_v21  ;;  %v1588_v56 = vpack.c.bf16 %v266_v52, %v264_v51  ;;  %v271_v57 = vld [vmem:[%s2632_s1 + $0x278] sm:$0xff]  ;;  %v216_v59 = vld [vmem:[%s2632_s1 + $0xc0] sm:$0xff]  ;;  %v270_v62 = vld [vmem:[%s2632_s1 + $0x270] sm:$0xff]  ;;  %v1538_v63 = vpack.c.bf16 %v219_v54, %v217_v53 }
  0x13   : > { %1585 = vmatpush1.bf16.msra.mxu1 %v1584_v45  ;;  %v1590_v60 = vpack.c.bf16 %v271_v57, %v269_v55  ;;  %v268_v61 = vld [vmem:[%s2632_s1 + $0x260] sm:$0xff]  ;;  %v218_v0 = vld [vmem:[%s2632_s1 + $0xd0] sm:$0xff]  ;;  %v273_v1 = vld [vmem:[%s2632_s1 + $0x288] sm:$0xff] }
  0x14   : > { %1587 = vmatprep.subr.bf16.mxu1 %v1586_v50  ;;  %v275_v2 = vld [vmem:[%s2632_s1 + $0x298] sm:$0xff]  ;;  %v221_v3 = vld [vmem:[%s2632_s1 + $0xe8] sm:$0xff]  ;;  %v1592_v5 = vpack.c.bf16 %v270_v62, %v268_v61  ;;  %v1540_v6 = vpack.c.bf16 %v218_v0, %v216_v59  ;;  %v220_v8 = vld [vmem:[%s2632_s1 + $0xe0] sm:$0xff] }
  0x15   : > { %1529 = vmatpush1.bf16.msra.mxu0 %v1528_v28  ;;  %v223_v4 = vld [vmem:[%s2632_s1 + $0xf8] sm:$0xff]  ;;  %v1594_v9 = vpack.c.bf16 %v275_v2, %v273_v1  ;;  %v272_v10 = vld [vmem:[%s2632_s1 + $0x280] sm:$0xff]  ;;  %v274_v11 = vld [vmem:[%s2632_s1 + $0x290] sm:$0xff] }
  0x16   : > { %1531 = vmatprep.subr.bf16.mxu0 %v1530_v33  ;;  %v1542_v12 = vpack.c.bf16 %v223_v4, %v221_v3  ;;  %v222_v13 = vld [vmem:[%s2632_s1 + $0xf0] sm:$0xff]  ;;  %v277_v14 = vld [vmem:[%s2632_s1 + $0x2a8] sm:$0xff]  ;;  %v279_v15 = vld [vmem:[%s2632_s1 + $0x2b8] sm:$0xff]  ;;  %v1596_v18 = vpack.c.bf16 %v274_v11, %v272_v10 }
  0x17   : > { %1589 = vmatpush1.bf16.msra.mxu1 %v1588_v56  ;;  %v225_v16 = vld [vmem:[%s2632_s1 + $0x108] sm:$0xff]  ;;  %v227_v17 = vld [vmem:[%s2632_s1 + $0x118] sm:$0xff]  ;;  %v1544_v19 = vpack.c.bf16 %v222_v13, %v220_v8  ;;  %v224_v20 = vld [vmem:[%s2632_s1 + $0x100] sm:$0xff]  ;;  %v1598_v21 = vpack.c.bf16 %v279_v15, %v277_v14 }
  0x18   : > { %1591 = vmatprep.subr.bf16.mxu1 %v1590_v60  ;;  %v276_v22 = vld [vmem:[%s2632_s1 + $0x2a0] sm:$0xff]  ;;  %v278_v23 = vld [vmem:[%s2632_s1 + $0x2b0] sm:$0xff]  ;;  %v1546_v24 = vpack.c.bf16 %v227_v17, %v225_v16  ;;  %v281_v26 = vld [vmem:[%s2632_s1 + $0x2c8] sm:$0xff] }
  0x19   : > { %1533 = vmatpush1.bf16.msra.mxu0 %v1532_v43  ;;  %v226_v25 = vld [vmem:[%s2632_s1 + $0x110] sm:$0xff]  ;;  %v283_v27 = vld [vmem:[%s2632_s1 + $0x2d8] sm:$0xff]  ;;  %v229_v28 = vld [vmem:[%s2632_s1 + $0x128] sm:$0xff]  ;;  %v1600_v31 = vpack.c.bf16 %v278_v23, %v276_v22 }
  0x1a   : > { %1535 = vmatprep.subr.bf16.mxu0 %v1534_v48  ;;  %v231_v29 = vld [vmem:[%s2632_s1 + $0x138] sm:$0xff]  ;;  %v228_v30 = vld [vmem:[%s2632_s1 + $0x120] sm:$0xff]  ;;  %v1548_v32 = vpack.c.bf16 %v226_v25, %v224_v20  ;;  %v1602_v33 = vpack.c.bf16 %v283_v27, %v281_v26  ;;  %v282_v35 = vld [vmem:[%s2632_s1 + $0x2d0] sm:$0xff] }
  0x1b   : > { %1593 = vmatpush1.bf16.msra.mxu1 %v1592_v5  ;;  %v280_v34 = vld [vmem:[%s2632_s1 + $0x2c0] sm:$0xff]  ;;  %v145_v36 = vld [vmem:[%s2089_s7 + $0x8] sm:$0xff]  ;;  %v1550_v37 = vpack.c.bf16 %v231_v29, %v229_v28  ;;  %v230_v38 = vld [vmem:[%s2632_s1 + $0x130] sm:$0xff] }
  0x1c   : > { %1595 = vmatprep.subr.bf16.mxu1 %v1594_v9  ;;  %v285_v39 = vld [vmem:[%s2632_s1 + $0x2e8] sm:$0xff]  ;;  %v287_v40 = vld [vmem:[%s2632_s1 + $0x2f8] sm:$0xff]  ;;  %352 = vmatprep.mubr.f32.mxu0 %v145_v36  ;;  %v1604_v43 = vpack.c.bf16 %v282_v35, %v280_v34  ;;  %v1552_v44 = vpack.c.bf16 %v230_v38, %v228_v30  ;;  %v284_v46 = vld [vmem:[%s2632_s1 + $0x2e0] sm:$0xff] }
  0x1d   : > { %1537 = vmatpush1.bf16.msra.mxu0 %v1536_v58  ;;  %v233_v41 = vld [vmem:[%s2632_s1 + $0x148] sm:$0xff]  ;;  %v235_v42 = vld [vmem:[%s2632_s1 + $0x158] sm:$0xff]  ;;  %v1606_v45 = vpack.c.bf16 %v287_v40, %v285_v39  ;;  %v286_v47 = vld [vmem:[%s2632_s1 + $0x2f0] sm:$0xff] }
  0x1e   : > { %1539 = vmatprep.subr.bf16.mxu0 %v1538_v63  ;;  %v1554_v48 = vpack.c.bf16 %v235_v42, %v233_v41  ;;  %v232_v49 = vld [vmem:[%s2632_s1 + $0x140] sm:$0xff]  ;;  %v234_v50 = vld [vmem:[%s2632_s1 + $0x150] sm:$0xff]  ;;  %v237_v51 = vld [vmem:[%s2632_s1 + $0x168] sm:$0xff]  ;;  %v1608_v53 = vpack.c.bf16 %v286_v47, %v284_v46 }
  0x1f   : > { %1597 = vmatpush1.bf16.msra.mxu1 %v1596_v18  ;;  %v239_v52 = vld [vmem:[%s2632_s1 + $0x178] sm:$0xff]  ;;  %v1556_v54 = vpack.c.bf16 %v234_v50, %v232_v49  ;;  %v236_v56 = vld [vmem:[%s2632_s1 + $0x160] sm:$0xff]  ;;  %v238_v57 = vld [vmem:[%s2632_s1 + $0x170] sm:$0xff] }
  0x20   : > { %1599 = vmatprep.subr.bf16.mxu1 %v1598_v21  ;;  %v1558_v55 = vpack.c.bf16 %v239_v52, %v237_v51  ;;  %v241_v58 = vld [vmem:[%s2632_s1 + $0x188] sm:$0xff]  ;;  %v243_v59 = vld [vmem:[%s2632_s1 + $0x198] sm:$0xff]  ;;  %v146_v60 = vld [vmem:[%s2089_s7 + $0x10] sm:$0xff]  ;;  %v1560_v61 = vpack.c.bf16 %v238_v57, %v236_v56 }
  0x21   : > { %1541 = vmatpush1.bf16.msra.mxu0 %v1540_v6  ;;  %v1562_v62 = vpack.c.bf16 %v243_v59, %v241_v58  ;;  %v240_v63 = vld [vmem:[%s2632_s1 + $0x180] sm:$0xff]  ;;  %v242_v0 = vld [vmem:[%s2632_s1 + $0x190] sm:$0xff]  ;;  %v245_v1 = vld [vmem:[%s2632_s1 + $0x1a8] sm:$0xff] }
  0x22   : > { %1543 = vmatprep.subr.bf16.mxu0 %v1542_v12  ;;  %v247_v2 = vld [vmem:[%s2632_s1 + $0x1b8] sm:$0xff]  ;;  %v149_v3 = vld [vmem:[%s2089_s7 + $0x28] sm:$0xff]  ;;  %v1564_v4 = vpack.c.bf16 %v242_v0, %v240_v63  ;;  %v244_v6 = vld [vmem:[%s2632_s1 + $0x1a0] sm:$0xff] }
  0x23   : > { %1601 = vmatpush1.bf16.msra.mxu1 %v1600_v31  ;;  %v1566_v5 = vpack.c.bf16 %v247_v2, %v245_v1  ;;  %v246_v8 = vld [vmem:[%s2632_s1 + $0x1b0] sm:$0xff]  ;;  %v249_v9 = vld [vmem:[%s2632_s1 + $0x1c8] sm:$0xff]  ;;  %v251_v10 = vld [vmem:[%s2632_s1 + $0x1d8] sm:$0xff] }
  0x24   : > { %1603 = vmatprep.subr.bf16.mxu1 %v1602_v33  ;;  %v152_v11 = vld [vmem:[%s2089_s7 + $0x40] sm:$0xff]  ;;  %v1568_v12 = vpack.c.bf16 %v246_v8, %v244_v6  ;;  %v1570_v13 = vpack.c.bf16 %v251_v10, %v249_v9  ;;  %v250_v15 = vld [vmem:[%s2632_s1 + $0x1d0] sm:$0xff]  ;;  %v253_v16 = vld [vmem:[%s2632_s1 + $0x1e8] sm:$0xff] }
  0x25   : > { %1545 = vmatpush1.bf16.msra.mxu0 %v1544_v19  ;;  %v248_v14 = vld [vmem:[%s2632_s1 + $0x1c0] sm:$0xff]  ;;  %v255_v17 = vld [vmem:[%s2632_s1 + $0x1f8] sm:$0xff]  ;;  %v254_v22 = vld [vmem:[%s2632_s1 + $0x1f0] sm:$0xff] }
  0x26   : > { %1547 = vmatprep.subr.bf16.mxu0 %v1546_v24  ;;  %v155_v18 = vld [vmem:[%s2089_s7 + $0x58] sm:$0xff]  ;;  %v1572_v19 = vpack.c.bf16 %v250_v15, %v248_v14  ;;  %v1574_v20 = vpack.c.bf16 %v255_v17, %v253_v16  ;;  %v252_v21 = vld [vmem:[%s2632_s1 + $0x1e0] sm:$0xff]  ;;  %v158_v23 = vld [vmem:[%s2089_s7 + $0x70] sm:$0xff] }
  0x27   : > { %1605 = vmatpush1.bf16.msra.mxu1 %v1604_v43  ;;  %v1576_v24 = vpack.c.bf16 %v254_v22, %v252_v21  ;;  %v161_v25 = vld [vmem:[%s2089_s7 + $0x88] sm:$0xff]  ;;  %v144_v26 = vld [vmem:[%s2089_s7] sm:$0xff]  ;;  %v147_v29 = vld [vmem:[%s2089_s7 + $0x18] sm:$0xff] }
  0x28   : > { %1607 = vmatprep.subr.bf16.mxu1 %v1606_v45  ;;  %v148_v27 = vld [vmem:[%s2089_s7 + $0x20] sm:$0xff]  ;;  %v151_v30 = vld [vmem:[%s2089_s7 + $0x38] sm:$0xff]  ;;  %v154_v33 = vld [vmem:[%s2089_s7 + $0x50] sm:$0xff] }
  0x29   : > { %1549 = vmatpush1.bf16.msra.mxu0 %v1548_v32  ;;  %v164_v28 = vld [vmem:[%s2089_s7 + $0xa0] sm:$0xff]  ;;  %v167_v31 = vld [vmem:[%s2089_s7 + $0xb8] sm:$0xff]  ;;  %v150_v32 = vld [vmem:[%s2089_s7 + $0x30] sm:$0xff] }
  0x2a   : > { %1551 = vmatprep.subr.bf16.mxu0 %v1550_v37  ;;  %v170_v34 = vld [vmem:[%s2089_s7 + $0xd0] sm:$0xff]  ;;  %v153_v35 = vld [vmem:[%s2089_s7 + $0x48] sm:$0xff]  ;;  %v156_v38 = vld [vmem:[%s2089_s7 + $0x60] sm:$0xff] }
  0x2b   : > { %1609 = vmatpush1.bf16.msra.mxu1 %v1608_v53  ;;  %v157_v36 = vld [vmem:[%s2089_s7 + $0x68] sm:$0xff]  ;;  %v160_v39 = vld [vmem:[%s2089_s7 + $0x80] sm:$0xff]  ;;  %v159_v41 = vld [vmem:[%s2089_s7 + $0x78] sm:$0xff] }
  0x2c   : > { %v173_v37 = vld [vmem:[%s2089_s7 + $0xe8] sm:$0xff]  ;;  %v176_v40 = vld [vmem:[%s2089_s7 + $0x100] sm:$0xff]  ;;  %v163_v42 = vld [vmem:[%s2089_s7 + $0x98] sm:$0xff] }
  0x2d   : > { %1553 = vmatpush1.bf16.msra.mxu0 %v1552_v44  ;;  %v179_v43 = vld [vmem:[%s2089_s7 + $0x118] sm:$0xff]  ;;  %v162_v44 = vld [vmem:[%s2089_s7 + $0x90] sm:$0xff]  ;;  %v165_v47 = vld [vmem:[%s2089_s7 + $0xa8] sm:$0xff] }
  0x2e   : > { %1555 = vmatprep.subr.bf16.mxu0 %v1554_v48  ;;  %514 = vmatmul.mubr.f32.vlgmr.msra.gmra.mrb[0].mxu1 %v146_v60  ;;  %v166_v45 = vld [vmem:[%s2089_s7 + $0xb0] sm:$0xff]  ;;  %v169_v48 = vld [vmem:[%s2089_s7 + $0xc8] sm:$0xff]  ;;  %v168_v50 = vld [vmem:[%s2089_s7 + $0xc0] sm:$0xff] }
  0x2f   : > { %519 = vmatprep.mubr.f32.mxu1 %v1861_v7  ;;  %v182_v46 = vld [vmem:[%s2089_s7 + $0x130] sm:$0xff]  ;;  %v185_v49 = vld [vmem:[%s2089_s7 + $0x148] sm:$0xff]  ;;  %v172_v51 = vld [vmem:[%s2089_s7 + $0xe0] sm:$0xff] }
  0x30   : > { %v188_v52 = vld [vmem:[%s2089_s7 + $0x160] sm:$0xff]  ;;  %v171_v53 = vld [vmem:[%s2089_s7 + $0xd8] sm:$0xff]  ;;  %v174_v56 = vld [vmem:[%s2089_s7 + $0xf0] sm:$0xff] }
  0x31   : > { %1557 = vmatpush1.bf16.msra.mxu0 %v1556_v54  ;;  %v175_v54 = vld [vmem:[%s2089_s7 + $0xf8] sm:$0xff]  ;;  %v178_v57 = vld [vmem:[%s2089_s7 + $0x110] sm:$0xff]  ;;  %v177_v58 = vld [vmem:[%s2089_s7 + $0x108] sm:$0xff] }
  0x32   : > { %1559 = vmatprep.subr.bf16.mxu0 %v1558_v55  ;;  %520 = vmatmul.mubr.f32.gmra.mrb[2].mxu1 %v149_v3  ;;  %v191_v55 = vld [vmem:[%s2089_s7 + $0x178] sm:$0xff]  ;;  %v181_v59 = vld [vmem:[%s2089_s7 + $0x128] sm:$0xff]  ;;  %v180_v60 = vld [vmem:[%s2089_s7 + $0x120] sm:$0xff] }
  0x33   : > { %525 = vmatprep.mubr.f32.mxu1 %v1861_v7  ;;  %v186_v63 = vld [vmem:[%s2089_s7 + $0x150] sm:$0xff]  ;;  %v189_v1 = vld [vmem:[%s2089_s7 + $0x168] sm:$0xff]  ;;  %vm2344_vm1 = vmpackc.low %vm658_vm0, %vm658_vm0 }
  0x34   : > { %v190_v0 = vld [vmem:[%s2089_s7 + $0x170] sm:$0xff] }
  0x35   : > { %1561 = vmatpush1.bf16.msra.mxu0 %v1560_v61  ;;  %v184_v61 = vld [vmem:[%s2089_s7 + $0x140] sm:$0xff] }
  0x36   : > { %1563 = vmatprep.subr.bf16.mxu0 %v1562_v62  ;;  %526 = vmatmul.mubr.f32.gmra.mrb[4].mxu1 %v152_v11  ;;  %v187_v62 = vld [vmem:[%s2089_s7 + $0x158] sm:$0xff] }
  0x37   : > { %531 = vmatprep.mubr.f32.mxu1 %v1861_v7 }
  0x39   : > { %1565 = vmatpush1.bf16.msra.mxu0 %v1564_v4 }
  0x3a   : > { %1567 = vmatprep.subr.bf16.mxu0 %v1566_v5  ;;  %532 = vmatmul.mubr.f32.gmra.mrb[6].mxu1 %v155_v18 }
  0x3b   : > { %537 = vmatprep.mubr.f32.mxu1 %v1861_v7 }
  0x3d   : > { %1569 = vmatpush1.bf16.msra.mxu0 %v1568_v12 }
  0x3e   : > { %1571 = vmatprep.subr.bf16.mxu0 %v1570_v13  ;;  %538 = vmatmul.mubr.f32.gmra.mrb[8].mxu1 %v158_v23 }
  0x3f   : > { %543 = vmatprep.mubr.f32.mxu1 %v1861_v7 }
  0x41   : > { %1573 = vmatpush1.bf16.msra.mxu0 %v1572_v19 }
  0x42   : > { %1575 = vmatprep.subr.bf16.mxu0 %v1574_v20  ;;  %544 = vmatmul.mubr.f32.gmra.mrb[10].mxu1 %v161_v25 }
  0x43   : > { %549 = vmatprep.mubr.f32.mxu1 %v1861_v7 }
  0x45   : > { %1577 = vmatpush1.bf16.msra.mxu0 %v1576_v24 }
  0x46   : > { %550 = vmatmul.mubr.f32.gmra.mrb[12].mxu1 %v164_v28 }
  0x47   : > { %555 = vmatprep.mubr.f32.mxu1 %v1861_v7 }
  0x48   : > { %353 = vmatmul.mubr.f32.vlgmr.msra.gmra.mrb[0].mxu0 %v144_v26 }
  0x49   : > { %358 = vmatprep.mubr.f32.mxu0 %v148_v27 }
  0x4a   : > { %556 = vmatmul.mubr.f32.gmra.mrb[14].mxu1 %v167_v31 }
  0x4b   : > { %561 = vmatprep.mubr.f32.mxu1 %v1861_v7 }
  0x4c   : > { %359 = vmatmul.mubr.f32.gmra.mrb[2].mxu0 %v147_v29 }
  0x4d   : > { %364 = vmatprep.mubr.f32.mxu0 %v151_v30 }
  0x4e   : > { %562 = vmatmul.mubr.f32.gmra.mrb[16].mxu1 %v170_v34 }
  0x4f   : > { %567 = vmatprep.mubr.f32.mxu1 %v1861_v7 }
  0x50   : > { %365 = vmatmul.mubr.f32.gmra.mrb[4].mxu0 %v150_v32 }
  0x51   : > { %370 = vmatprep.mubr.f32.mxu0 %v154_v33 }
  0x52   : > { %568 = vmatmul.mubr.f32.gmra.mrb[18].mxu1 %v173_v37 }
  0x53   : > { %573 = vmatprep.mubr.f32.mxu1 %v1861_v7 }
  0x54   : > { %371 = vmatmul.mubr.f32.gmra.mrb[6].mxu0 %v153_v35 }
  0x55   : > { %376 = vmatprep.mubr.f32.mxu0 %v157_v36 }
  0x56   : > { %574 = vmatmul.mubr.f32.gmra.mrb[20].mxu1 %v176_v40 }
  0x57   : > { %579 = vmatprep.mubr.f32.mxu1 %v1861_v7 }
  0x58   : > { %377 = vmatmul.mubr.f32.gmra.mrb[8].mxu0 %v156_v38 }
  0x59   : > { %382 = vmatprep.mubr.f32.mxu0 %v160_v39 }
  0x5a   : > { %580 = vmatmul.mubr.f32.gmra.mrb[22].mxu1 %v179_v43 }
  0x5b   : > { %585 = vmatprep.mubr.f32.mxu1 %v1861_v7 }
  0x5c   : > { %383 = vmatmul.mubr.f32.gmra.mrb[10].mxu0 %v159_v41 }
  0x5d   : > { %388 = vmatprep.mubr.f32.mxu0 %v163_v42 }
  0x5e   : > { %586 = vmatmul.mubr.f32.gmra.mrb[24].mxu1 %v182_v46 }
  0x5f   : > { %591 = vmatprep.mubr.f32.mxu1 %v1861_v7 }
  0x60   : > { %389 = vmatmul.mubr.f32.gmra.mrb[12].mxu0 %v162_v44 }
  0x61   : > { %394 = vmatprep.mubr.f32.mxu0 %v166_v45 }
  0x62   : > { %592 = vmatmul.mubr.f32.gmra.mrb[26].mxu1 %v185_v49 }
  0x63   : > { %597 = vmatprep.mubr.f32.mxu1 %v1861_v7 }
  0x64   : > { %395 = vmatmul.mubr.f32.gmra.mrb[14].mxu0 %v165_v47 }
  0x65   : > { %400 = vmatprep.mubr.f32.mxu0 %v169_v48 }
  0x66   : > { %598 = vmatmul.mubr.f32.gmra.mrb[28].mxu1 %v188_v52 }
  0x67   : > { %603 = vmatprep.mubr.f32.mxu1 %v1861_v7  ;;  %v183_v7 = vld [vmem:[%s2089_s7 + $0x138] sm:$0xff]  ;;  %s1862_s7 = smov 64  }
  0x68   : > { %401 = vmatmul.mubr.f32.gmra.mrb[16].mxu0 %v168_v50 }
  0x69   : > { %406 = vmatprep.mubr.f32.mxu0 %v172_v51 }
  0x6a   : > { %604 = vmatmul.mubr.f32.gmra.mrb[30].mxu1 %v191_v55 }
  0x6c   : > { %407 = vmatmul.mubr.f32.gmra.mrb[18].mxu0 %v171_v53 }
  0x6d   : > { %412 = vmatprep.mubr.f32.mxu0 %v175_v54 }
  0x70   : > { %413 = vmatmul.mubr.f32.gmra.mrb[20].mxu0 %v174_v56 }
  0x71   : > { %418 = vmatprep.mubr.f32.mxu0 %v178_v57 }
  0x74   : > { %419 = vmatmul.mubr.f32.gmra.mrb[22].mxu0 %v177_v58 }
  0x75   : > { %424 = vmatprep.mubr.f32.mxu0 %v181_v59 }
  0x78   : > { %425 = vmatmul.mubr.f32.gmra.mrb[24].mxu0 %v180_v60 }
  0x79   : > { %430 = vmatprep.mubr.f32.mxu0 %v184_v61 }
  0x7c   : > { %431 = vmatmul.mubr.f32.gmra.mrb[26].mxu0 %v183_v7 }
  0x7d   : > { %436 = vmatprep.mubr.f32.mxu0 %v187_v62 }
  0x80   : > { %437 = vmatmul.mubr.f32.gmra.mrb[28].mxu0 %v186_v63 }
  0x81   : > { %442 = vmatprep.mubr.f32.mxu0 %v190_v0 }
  0x84   : > { %443 = vmatmul.mubr.f32.gmra.mrb[30].mxu0 %v189_v1 }
 0x101   : > { %v515_v2 = vpop.f32.mrb[0].mxu1 }
 0x102   : > { %v517_v3 = vpop.f32.mrb[1].mxu1 }
 0x105   : > { %v521_v4 = vpop.f32.mrb[2].mxu1 }
 0x106   : > { %v523_v5 = vpop.f32.mrb[3].mxu1 }
 0x109   : > { %v527_v6 = vpop.f32.mrb[4].mxu1 }
 0x10a   : > { %v529_v8 = vpop.f32.mrb[5].mxu1 }
 0x10d   : > { %v533_v9 = vpop.f32.mrb[6].mxu1 }
 0x10e   : > { %v535_v10 = vpop.f32.mrb[7].mxu1 }
 0x111   : > { %v539_v11 = vpop.f32.mrb[8].mxu1 }
 0x112   : > { %v541_v12 = vpop.f32.mrb[9].mxu1 }
 0x115   : > { %v545_v13 = vpop.f32.mrb[10].mxu1 }
 0x116   : > { %v547_v15 = vpop.f32.mrb[11].mxu1 }
 0x119   : > { %v551_v19 = vpop.f32.mrb[12].mxu1 }
 0x11a   : > { %v553_v21 = vpop.f32.mrb[13].mxu1 }
 0x11b   : > { %v354_v14 = vpop.f32.mrb[0].mxu0 }
 0x11c   : > { %v516_v16 = vadd.f32 %v515_v2, %v354_v14  ;;  %v356_v17 = vpop.f32.mrb[1].mxu0 }
 0x11d   : > { %v518_v18 = vadd.f32 %v517_v3, %v356_v17  ;;  %v557_v26 = vpop.f32.mrb[14].mxu1 }
 0x11e   : > { %1434 = vmatprep.mubr.msk.f32.mxu1 %vm658_vm0, %v516_v16  ;;  %v559_v29 = vpop.f32.mrb[15].mxu1 }
 0x11f   : > { %v360_v20 = vpop.f32.mrb[2].mxu0 }
 0x120   : > { %v2257_v22 = vadd.f32 %v521_v4, %v360_v20  ;;  %v362_v23 = vpop.f32.mrb[3].mxu0 }
 0x121   : > { %v524_v24 = vadd.f32 %v523_v5, %v362_v23  ;;  %v563_v33 = vpop.f32.mrb[16].mxu1 }
 0x122   : > { %v1749_v25 = vpack.i.bf16 %v2257_v22, %v516_v16  ;;  %v565_v35 = vpop.f32.mrb[17].mxu1 }
 0x123   : > { %v2260_v27 = vpack.c.bf16 %v524_v24, %v518_v18  ;;  %v366_v28 = vpop.f32.mrb[4].mxu0 }
 0x124   : > { %v2262_v30 = vadd.f32 %v527_v6, %v366_v28  ;;  %1750 = vrot.lane.b32.xlu0 %v1749_v25, %s1862_s7  ;;  %v368_v31 = vpop.f32.mrb[5].mxu0 }
 0x125   : > { %v530_v32 = vadd.f32 %v529_v8, %v368_v31  ;;  %1659 = vmatprep.subr.bf16.mxu0 %v2260_v27  ;;  %v569_v40 = vpop.f32.mrb[18].mxu1 }
 0x126   : > { %1661 = vmatpush3.bf16.msra.mxu0 %v2260_v27  ;;  %v571_v43 = vpop.f32.mrb[19].mxu1 }
 0x127   : > { %v372_v34 = vpop.f32.mrb[6].mxu0 }
 0x128   : > { %v2267_v36 = vadd.f32 %v533_v9, %v372_v34  ;;  %v374_v37 = vpop.f32.mrb[7].mxu0 }
 0x129   : > { %v536_v38 = vadd.f32 %v535_v10, %v374_v37  ;;  %v575_v47 = vpop.f32.mrb[20].mxu1 }
 0x12a   : > { %v1754_v39 = vpack.i.bf16 %v2267_v36, %v2262_v30  ;;  %v577_v49 = vpop.f32.mrb[21].mxu1 }
 0x12b   : > { %v2271_v41 = vpack.c.bf16 %v536_v38, %v530_v32  ;;  %v378_v42 = vpop.f32.mrb[8].mxu0 }
 0x12c   : > { %v2273_v44 = vadd.f32 %v539_v11, %v378_v42  ;;  %1755 = vrot.lane.b32.xlu0 %v1754_v39, %s1862_s7  ;;  %v380_v45 = vpop.f32.mrb[9].mxu0 }
 0x12d   : > { %v542_v46 = vadd.f32 %v541_v12, %v380_v45  ;;  %1663 = vmatprep.subr.bf16.mxu0 %v2271_v41  ;;  %v581_v54 = vpop.f32.mrb[22].mxu1 }
 0x12e   : > { %1665 = vmatpush3.bf16.msra.mxu0 %v2271_v41  ;;  %v583_v57 = vpop.f32.mrb[23].mxu1 }
 0x12f   : > { %v384_v48 = vpop.f32.mrb[10].mxu0 }
 0x130   : > { %v2278_v50 = vadd.f32 %v545_v13, %v384_v48  ;;  %v386_v51 = vpop.f32.mrb[11].mxu0 }
 0x131   : > { %v548_v52 = vadd.f32 %v547_v15, %v386_v51  ;;  %v587_v61 = vpop.f32.mrb[24].mxu1 }
 0x132   : > { %v1759_v53 = vpack.i.bf16 %v2278_v50, %v2273_v44  ;;  %v589_v62 = vpop.f32.mrb[25].mxu1 }
 0x133   : > { %v2282_v55 = vpack.c.bf16 %v548_v52, %v542_v46  ;;  %v390_v56 = vpop.f32.mrb[12].mxu0 }
 0x134   : > { %v2284_v58 = vadd.f32 %v551_v19, %v390_v56  ;;  %1760 = vrot.lane.b32.xlu1 %v1759_v53, %s1862_s7  ;;  %v392_v59 = vpop.f32.mrb[13].mxu0 }
 0x135   : > { %v554_v60 = vadd.f32 %v553_v21, %v392_v59  ;;  %1667 = vmatprep.subr.bf16.mxu0 %v2282_v55  ;;  %v593_v3 = vpop.f32.mrb[26].mxu1 }
 0x136   : > { %1669 = vmatpush3.bf16.msra.mxu0 %v2282_v55  ;;  %v595_v6 = vpop.f32.mrb[27].mxu1 }
 0x137   : > { %v396_v7 = vpop.f32.mrb[14].mxu0 }
 0x138   : > { %v2289_v63 = vadd.f32 %v557_v26, %v396_v7  ;;  %v398_v0 = vpop.f32.mrb[15].mxu0 }
 0x139   : > { %v560_v1 = vadd.f32 %v559_v29, %v398_v0  ;;  %v599_v11 = vpop.f32.mrb[28].mxu1 }
 0x13a   : > { %v1764_v2 = vpack.i.bf16 %v2289_v63, %v2284_v58  ;;  %v601_v13 = vpop.f32.mrb[29].mxu1 }
 0x13b   : > { %v2293_v4 = vpack.c.bf16 %v560_v1, %v554_v60  ;;  %v402_v5 = vpop.f32.mrb[16].mxu0 }
 0x13c   : > { %v2295_v8 = vadd.f32 %v563_v33, %v402_v5  ;;  %1765 = vrot.lane.b32.xlu1 %v1764_v2, %s1862_s7  ;;  %v404_v9 = vpop.f32.mrb[17].mxu0 }
 0x13d   : > { %v566_v10 = vadd.f32 %v565_v35, %v404_v9  ;;  %1671 = vmatprep.subr.bf16.mxu0 %v2293_v4  ;;  %v605_v18 = vpop.f32.mrb[30].mxu1 }
 0x13e   : > { %1673 = vmatpush3.bf16.msra.mxu0 %v2293_v4  ;;  %v607_v21 = vpop.f32.mrb[31].mxu1 }
 0x13f   : > { %v408_v12 = vpop.f32.mrb[18].mxu0 }
 0x140   : > { %v2300_v14 = vadd.f32 %v569_v40, %v408_v12  ;;  %v410_v15 = vpop.f32.mrb[19].mxu0 }
 0x141   : > { %v572_v16 = vadd.f32 %v571_v43, %v410_v15 }
 0x142   : > { %v1769_v17 = vpack.i.bf16 %v2300_v14, %v2295_v8 }
 0x143   : > { %v2304_v19 = vpack.c.bf16 %v572_v16, %v566_v10  ;;  %v414_v20 = vpop.f32.mrb[20].mxu0 }
 0x144   : > { %v2306_v23 = vadd.f32 %v575_v47, %v414_v20  ;;  %1770 = vrot.lane.b32.xlu0 %v1769_v17, %s1862_s7  ;;  %v416_v24 = vpop.f32.mrb[21].mxu0 }
 0x145   : > { %v578_v25 = vadd.f32 %v577_v49, %v416_v24  ;;  %1675 = vmatprep.subr.bf16.mxu0 %v2304_v19 }
 0x146   : > { %1677 = vmatpush3.bf16.msra.mxu0 %v2304_v19 }
 0x147   : > { %v420_v26 = vpop.f32.mrb[22].mxu0 }
 0x148   : > { %v2311_v28 = vadd.f32 %v581_v54, %v420_v26  ;;  %v422_v29 = vpop.f32.mrb[23].mxu0 }
 0x149   : > { %v584_v31 = vadd.f32 %v583_v57, %v422_v29 }
 0x14a   : > { %v1774_v32 = vpack.i.bf16 %v2311_v28, %v2306_v23 }
 0x14b   : > { %v2315_v33 = vpack.c.bf16 %v584_v31, %v578_v25  ;;  %v426_v34 = vpop.f32.mrb[24].mxu0 }
 0x14c   : > { %v2317_v35 = vadd.f32 %v587_v61, %v426_v34  ;;  %1775 = vrot.lane.b32.xlu1 %v1774_v32, %s1862_s7  ;;  %v428_v37 = vpop.f32.mrb[25].mxu0 }
 0x14d   : > { %v590_v38 = vadd.f32 %v589_v62, %v428_v37  ;;  %1679 = vmatprep.subr.bf16.mxu0 %v2315_v33 }
 0x14e   : > { %1681 = vmatpush3.bf16.msra.mxu0 %v2315_v33 }
 0x14f   : > { %v432_v39 = vpop.f32.mrb[26].mxu0 }
 0x150   : > { %v2322_v40 = vadd.f32 %v593_v3, %v432_v39  ;;  %v434_v42 = vpop.f32.mrb[27].mxu0 }
 0x151   : > { %v596_v43 = vadd.f32 %v595_v6, %v434_v42 }
 0x152   : > { %v1779_v45 = vpack.i.bf16 %v2322_v40, %v2317_v35 }
 0x153   : > { %v2326_v46 = vpack.c.bf16 %v596_v43, %v590_v38  ;;  %v438_v47 = vpop.f32.mrb[28].mxu0 }
 0x154   : > { %v2328_v48 = vadd.f32 %v599_v11, %v438_v47  ;;  %1780 = vrot.lane.b32.xlu0 %v1779_v45, %s1862_s7  ;;  %v440_v49 = vpop.f32.mrb[29].mxu0 }
 0x155   : > { %v602_v51 = vadd.f32 %v601_v13, %v440_v49  ;;  %1683 = vmatprep.subr.bf16.mxu0 %v2326_v46 }
 0x156   : > { %1685 = vmatpush3.bf16.msra.mxu0 %v2326_v46 }
 0x157   : > { %v444_v52 = vpop.f32.mrb[30].mxu0 }
 0x158   : > { %v2333_v53 = vadd.f32 %v605_v18, %v444_v52  ;;  %v446_v54 = vpop.f32.mrb[31].mxu0 }
 0x159   : > { %v608_v56 = vadd.f32 %v607_v21, %v446_v54 }
 0x15a   : > { %v1784_v57 = vpack.i.bf16 %v2333_v53, %v2328_v48 }
 0x15b   : > { %v2337_v59 = vpack.c.bf16 %v608_v56, %v602_v51 }
 0x15c   : > { %1785 = vrot.lane.b32.xlu1 %v1784_v57, %s1862_s7 }
 0x15d   : > { %1687 = vmatprep.subr.bf16.mxu0 %v2337_v59 }
 0x15e   : > { %1689 = vmatpush3.bf16.msra.mxu0 %v2337_v59 }
 0x196   : > { %v1751_v60 = vpop.permute.xlu0 %1750 }
 0x197   : > { %v1753_v61 = vunpack.i.h.bf16 %v1751_v60  ;;  %v1752_v7 = vunpack.i.l.bf16 %v1751_v60 }
 0x199   : > { %v1610_v0 = vpack.c.bf16 %v1753_v61, %v1752_v7 }
 0x19b   : > { %1612 = vmatprep.subr.msk.bf16.mxu1 %vm2344_vm1, %v1610_v0 }
 0x19c   : > { %1615 = vmatpush3.bf16.xpose.msk.msra.mxu1 %vm2344_vm1, %v1610_v0 }
 0x19e   : > { %v1756_v1 = vpop.permute.xlu0 %1755 }
 0x19f   : > { %v1758_v2 = vunpack.i.h.bf16 %v1756_v1  ;;  %v1757_v3 = vunpack.i.l.bf16 %v1756_v1 }
 0x1a1   : > { %v1616_v5 = vpack.c.bf16 %v1758_v2, %v1757_v3 }
 0x1a3   : > { %1618 = vmatprep.subr.msk.bf16.mxu1 %vm2344_vm1, %v1616_v5 }
 0x1a4   : > { %1621 = vmatpush3.bf16.xpose.msk.msra.mxu1 %vm2344_vm1, %v1616_v5 }
 0x1a6   : > { %v1761_v6 = vpop.permute.xlu1 %1760 }
 0x1a7   : > { %v1763_v9 = vunpack.i.h.bf16 %v1761_v6  ;;  %v1762_v10 = vunpack.i.l.bf16 %v1761_v6 }
 0x1a9   : > { %v1622_v11 = vpack.c.bf16 %v1763_v9, %v1762_v10 }
 0x1ab   : > { %1624 = vmatprep.subr.msk.bf16.mxu1 %vm2344_vm1, %v1622_v11 }
 0x1ac   : > { %1627 = vmatpush3.bf16.xpose.msk.msra.mxu1 %vm2344_vm1, %v1622_v11 }
 0x1ae   : > { %v1766_v12 = vpop.permute.xlu1 %1765 }
 0x1af   : > { %v1768_v13 = vunpack.i.h.bf16 %v1766_v12  ;;  %v1767_v15 = vunpack.i.l.bf16 %v1766_v12 }
 0x1b1   : > { %v1628_v16 = vpack.c.bf16 %v1768_v13, %v1767_v15 }
 0x1b3   : > { %1630 = vmatprep.subr.msk.bf16.mxu1 %vm2344_vm1, %v1628_v16 }
 0x1b4   : > { %1633 = vmatpush3.bf16.xpose.msk.msra.mxu1 %vm2344_vm1, %v1628_v16 }
 0x1b6   : > { %v1771_v17 = vpop.permute.xlu0 %1770 }
 0x1b7   : > { %v1773_v18 = vunpack.i.h.bf16 %v1771_v17  ;;  %v1772_v20 = vunpack.i.l.bf16 %v1771_v17 }
 0x1b9   : > { %v1634_v21 = vpack.c.bf16 %v1773_v18, %v1772_v20 }
 0x1bb   : > { %1636 = vmatprep.subr.msk.bf16.mxu1 %vm2344_vm1, %v1634_v21 }
 0x1bc   : > { %1639 = vmatpush3.bf16.xpose.msk.msra.mxu1 %vm2344_vm1, %v1634_v21 }
 0x1be   : > { %v1776_v24 = vpop.permute.xlu1 %1775 }
 0x1bf   : > { %v1778_v25 = vunpack.i.h.bf16 %v1776_v24  ;;  %v1777_v26 = vunpack.i.l.bf16 %v1776_v24 }
 0x1c1   : > { %v1640_v29 = vpack.c.bf16 %v1778_v25, %v1777_v26 }
 0x1c3   : > { %1642 = vmatprep.subr.msk.bf16.mxu1 %vm2344_vm1, %v1640_v29 }
 0x1c4   : > { %1645 = vmatpush3.bf16.xpose.msk.msra.mxu1 %vm2344_vm1, %v1640_v29 }
 0x1c6   : > { %v1781_v31 = vpop.permute.xlu0 %1780 }
 0x1c7   : > { %v1783_v32 = vunpack.i.h.bf16 %v1781_v31  ;;  %v1782_v34 = vunpack.i.l.bf16 %v1781_v31 }
 0x1c9   : > { %v1646_v37 = vpack.c.bf16 %v1783_v32, %v1782_v34 }
 0x1cb   : > { %1648 = vmatprep.subr.msk.bf16.mxu1 %vm2344_vm1, %v1646_v37 }
 0x1cc   : > { %1651 = vmatpush3.bf16.xpose.msk.msra.mxu1 %vm2344_vm1, %v1646_v37 }
 0x1ce   : > { %v1786_v38 = vpop.permute.xlu1 %1785 }
 0x1cf   : > { %v1788_v39 = vunpack.i.h.bf16 %v1786_v38  ;;  %v1787_v42 = vunpack.i.l.bf16 %v1786_v38 }
 0x1d1   : > { %v1652_v43 = vpack.c.bf16 %v1788_v39, %v1787_v42 }
 0x1d3   : > { %1654 = vmatprep.subr.msk.bf16.mxu1 %vm2344_vm1, %v1652_v43 }
 0x1d4   : > { %1657 = vmatpush3.bf16.xpose.msk.msra.mxu1 %vm2344_vm1, %v1652_v43 }
 0x1d5   : > { %1690 = vmatprep.subr.bf16.mxu1 %v2260_v27 }
 0x1db   : > { %1435 = vmatmul.mubr.msk.f32.vlgmr.msra.gmra.mrb[32].mxu1 %vm658_vm0, %v2257_v22  ;;  %v884_v22 = vlaneseq }
 0x1dc   : > { %1437 = vmatprep.mubr.msk.f32.mxu1 %vm658_vm0, %v2262_v30  ;;  %1698 = vmatpush3.bf16.msra.mxu1 %v2260_v27 }
 0x1dd   : > { %1691 = vmatprep.subr.bf16.mxu1 %v2271_v41  ;;  %v2426_v27 = vshrl.u32 %v884_v22, 7 }
 0x1df   : > { %1438 = vmatmul.mubr.msk.f32.gmra.mrb[34].mxu1 %vm658_vm0, %v2267_v36  ;;  %v886_v30 = vadd.s32 8, %v2426_v27  ;;  %v2429_v36 = vand.u32 127, %v884_v22  ;;  %v894_v47 = vadd.s32 72, %v2426_v27  ;;  %v893_v49 = vadd.s32 64, %v2426_v27 }
 0x1e0   : > { %1440 = vmatprep.mubr.msk.f32.mxu1 %vm658_vm0, %v2273_v44  ;;  %1699 = vmatpush3.bf16.msra.mxu1 %v2271_v41  ;;  %v888_v44 = vadd.s32 24, %v2426_v27  ;;  %v896_v52 = vadd.s32 88, %v2426_v27  ;;  %v889_v56 = vadd.s32 32, %v2426_v27  ;;  %v895_v62 = vadd.s32 80, %v2426_v27 }
 0x1e1   : > { %1692 = vmatprep.subr.bf16.mxu1 %v2282_v55  ;;  %vm904_vm2 = vcmp.le.s32.totalorder %v2429_v36, %v886_v30  ;;  %vm903_vm3 = vcmp.le.s32.totalorder %v2429_v36, %v2426_v27  ;;  %vm912_vm6 = vcmp.le.s32.totalorder %v2429_v36, %v894_v47  ;;  %vm911_vm7 = vcmp.le.s32.totalorder %v2429_v36, %v893_v49 }
 0x1e2   : > { %vm906_vm4 = vcmp.le.s32.totalorder %v2429_v36, %v888_v44  ;;  %vm914_vm8 = vcmp.le.s32.totalorder %v2429_v36, %v896_v52  ;;  %vm907_vm9 = vcmp.le.s32.totalorder %v2429_v36, %v889_v56  ;;  %v890_v2 = vadd.s32 40, %v2426_v27 }
 0x1e3   : > { %1441 = vmatmul.mubr.msk.f32.gmra.mrb[36].mxu1 %vm658_vm0, %v2278_v50  ;;  %vm913_vm10 = vcmp.le.s32.totalorder %v2429_v36, %v895_v62  ;;  %v898_v11 = vadd.s32 104, %v2426_v27  ;;  %v891_v13 = vadd.s32 48, %v2426_v27  ;;  %v897_v21 = vadd.s32 96, %v2426_v27 }
 0x1e4   : > { %1443 = vmatprep.mubr.msk.f32.mxu1 %vm658_vm0, %v2284_v58  ;;  %1700 = vmatpush3.bf16.msra.mxu1 %v2282_v55  ;;  %vm908_vm11 = vcmp.le.s32.totalorder %v2429_v36, %v890_v2  ;;  %v892_v25 = vadd.s32 56, %v2426_v27  ;;  %v899_v34 = vadd.s32 112, %v2426_v27  ;;  %v900_v42 = vadd.s32 120, %v2426_v27 }
 0x1e5   : > { %1693 = vmatprep.subr.bf16.mxu1 %v2293_v4  ;;  %vm916_vm12 = vcmp.le.s32.totalorder %v2429_v36, %v898_v11  ;;  %vm909_vm13 = vcmp.le.s32.totalorder %v2429_v36, %v891_v13  ;;  %vm915_vm14 = vcmp.le.s32.totalorder %v2429_v36, %v897_v21 }
 0x1e6   : > { %vm910_vm15 = vcmp.le.s32.totalorder %v2429_v36, %v892_v25  ;;  %vm917_vm1 = vcmp.le.s32.totalorder %v2429_v36, %v899_v34 }
 0x1e7   : > { %1444 = vmatmul.mubr.msk.f32.gmra.mrb[38].mxu1 %vm658_vm0, %v2289_v63 }
 0x1e8   : > { %1446 = vmatprep.mubr.msk.f32.mxu1 %vm658_vm0, %v2295_v8  ;;  %1701 = vmatpush3.bf16.msra.mxu1 %v2293_v4  ;;  %v887_v8 = vadd.s32 16, %v2426_v27 }
 0x1e9   : > { %1694 = vmatprep.subr.bf16.mxu1 %v2304_v19 }
 0x1ea   : > { %vm905_vm5 = vcmp.le.s32.totalorder %v2429_v36, %v887_v8 }
 0x1eb   : > { %1447 = vmatmul.mubr.msk.f32.gmra.mrb[40].mxu1 %vm658_vm0, %v2300_v14 }
 0x1ec   : > { %1449 = vmatprep.mubr.msk.f32.mxu1 %vm658_vm0, %v2306_v23  ;;  %1702 = vmatpush3.bf16.msra.mxu1 %v2304_v19 }
 0x1ed   : > { %1695 = vmatprep.subr.bf16.mxu1 %v2315_v33 }
 0x1ef   : > { %1450 = vmatmul.mubr.msk.f32.gmra.mrb[42].mxu1 %vm658_vm0, %v2311_v28 }
 0x1f0   : > { %1452 = vmatprep.mubr.msk.f32.mxu1 %vm658_vm0, %v2317_v35  ;;  %1703 = vmatpush3.bf16.msra.mxu1 %v2315_v33 }
 0x1f1   : > { %1696 = vmatprep.subr.bf16.mxu1 %v2326_v46 }
 0x1f3   : > { %1453 = vmatmul.mubr.msk.f32.gmra.mrb[44].mxu1 %vm658_vm0, %v2322_v40 }
 0x1f4   : > { %1455 = vmatprep.mubr.msk.f32.mxu1 %vm658_vm0, %v2328_v48  ;;  %1704 = vmatpush3.bf16.msra.mxu1 %v2326_v46 }
 0x1f5   : > { %1697 = vmatprep.subr.bf16.mxu1 %v2337_v59 }
 0x1f7   : > { %1456 = vmatmul.mubr.msk.f32.gmra.mrb[46].mxu1 %vm658_vm0, %v2333_v53 }
 0x1f8   : > { %1705 = vmatpush3.bf16.msra.mxu1 %v2337_v59 }
 0x2ae   : > { %v1436_v41 = vpop.f32.mrb[32].mxu1 }
 0x2af   : > { %v869_v50 = vmul.f32 0.125, %v1436_v41  ;;  %v789_v55 = vpop.f32.mrb[33].mxu1 }
 0x2b0   : > { %v868_v58 = vmul.f32 0.125, %v789_v55 }
 0x2b1   : > { %v2433_v63 = vsel %vm904_vm2, %v869_v50, -inf  ;;  %vm918_vm2 = vcmp.le.s32.totalorder %v2429_v36, %v900_v42 }
 0x2b2   : > { %937 = vmax.xlane.f32.xlu0 %v2433_v63  ;;  %v1439_v4 = vpop.f32.mrb[34].mxu1  ;;  %v2440_v28 = vsel %vm903_vm3, %v868_v58, -inf }
 0x2b3   : > { %v871_v14 = vmul.f32 0.125, %v1439_v4  ;;  %v799_v19 = vpop.f32.mrb[35].mxu1 }
 0x2b4   : > { %v870_v23 = vmul.f32 0.125, %v799_v19 }
 0x2b5   : > { %v2442_v33 = vsel %vm906_vm4, %v871_v14, -inf }
 0x2b6   : > { %935 = vmax.xlane.f32.xlu0 %v2440_v28  ;;  %941 = vmax.xlane.f32.xlu1 %v2442_v33  ;;  %v1442_v35 = vpop.f32.mrb[36].mxu1  ;;  %v2447_v45 = vsel %vm905_vm5, %v870_v23, -inf }
 0x2b7   : > { %v809_v40 = vpop.f32.mrb[37].mxu1  ;;  %v873_v6 = vmul.f32 0.125, %v1442_v35 }
 0x2b8   : > { %v872_v60 = vmul.f32 0.125, %v809_v40 }
 0x2b9   : > { %v2479_v20 = vsel %vm908_vm11, %v873_v6, -inf }
 0x2ba   : > { %939 = vmax.xlane.f32.xlu1 %v2447_v45  ;;  %v1445_v46 = vpop.f32.mrb[38].mxu1  ;;  %v2469_v10 = vsel %vm907_vm9, %v872_v60, -inf }
 0x2bb   : > { %v819_v48 = vpop.f32.mrb[39].mxu1  ;;  %v875_v31 = vmul.f32 0.125, %v1445_v46 }
 0x2bc   : > { %v874_v17 = vmul.f32 0.125, %v819_v48 }
 0x2bd   : > { %v2498_v39 = vsel %vm910_vm15, %v875_v31, -inf }
 0x2be   : > { %v1448_v51 = vpop.f32.mrb[40].mxu1  ;;  %v2489_v32 = vsel %vm909_vm13, %v874_v17, -inf }
 0x2bf   : > { %v877_v53 = vmul.f32 0.125, %v1448_v51  ;;  %v829_v54 = vpop.f32.mrb[41].mxu1 }
 0x2c0   : > { %v876_v57 = vmul.f32 0.125, %v829_v54 }
 0x2c1   : > { %v2456_v59 = vsel %vm912_vm6, %v877_v53, -inf }
 0x2c2   : > { %953 = vmax.xlane.f32.xlu0 %v2456_v59  ;;  %v1451_v61 = vpop.f32.mrb[42].mxu1  ;;  %v2459_v7 = vsel %vm911_vm7, %v876_v57, -inf }
 0x2c3   : > { %v879_v0 = vmul.f32 0.125, %v1451_v61  ;;  %951 = vmax.xlane.f32.xlu1 %v2459_v7  ;;  %v839_v1 = vpop.f32.mrb[43].mxu1 }
 0x2c4   : > { %v878_v3 = vmul.f32 0.125, %v839_v1 }
 0x2c5   : > { %v2466_v5 = vsel %vm914_vm8, %v879_v0, -inf }
 0x2c6   : > { %957 = vmax.xlane.f32.xlu0 %v2466_v5  ;;  %v1454_v9 = vpop.f32.mrb[44].mxu1  ;;  %v2476_v16 = vsel %vm913_vm10, %v878_v3, -inf }
 0x2c7   : > { %943 = vmax.xlane.f32.xlu1 %v2469_v10  ;;  %v849_v12 = vpop.f32.mrb[45].mxu1  ;;  %v881_v15 = vmul.f32 0.125, %v1454_v9 }
 0x2c8   : > { %v880_v26 = vmul.f32 0.125, %v849_v12 }
 0x2c9   : > { %v2486_v29 = vsel %vm916_vm12, %v881_v15, -inf }
 0x2ca   : > { %955 = vmax.xlane.f32.xlu0 %v2476_v16  ;;  %v1457_v18 = vpop.f32.mrb[46].mxu1  ;;  %v2495_v38 = vsel %vm915_vm14, %v880_v26, -inf }
 0x2cb   : > { %945 = vmax.xlane.f32.xlu1 %v2479_v20  ;;  %v859_v24 = vpop.f32.mrb[47].mxu1  ;;  %v883_v43 = vmul.f32 0.125, %v1457_v18 }
 0x2cc   : > { %v882_v37 = vmul.f32 0.125, %v859_v24 }
 0x2cd   : > { %v2507_v30 = vsel %vm918_vm2, %v883_v43, -inf }
 0x2ce   : > { %961 = vmax.xlane.f32.xlu0 %v2486_v29  ;;  %v2503_v22 = vsel %vm917_vm1, %v882_v37, -inf }
 0x2cf   : > { %947 = vmax.xlane.f32.xlu1 %v2489_v32 }
 0x2d2   : > { %959 = vmax.xlane.f32.xlu0 %v2495_v38 }
 0x2d3   : > { %949 = vmax.xlane.f32.xlu1 %v2498_v39 }
 0x2d6   : > { %963 = vmax.xlane.f32.xlu0 %v2503_v22 }
 0x2da   : > { %965 = vmax.xlane.f32.xlu0 %v2507_v30 }
 0x33f   : > { %v938_v41 = vpop.xlane.xlu0 %937 }
 0x340   : > { %v968_v44 = vsub.f32 %v2433_v63, %v938_v41 }
 0x342   : > { %v985_v50 = vmul.f32 1.442695, %v968_v44 }
 0x343   : > { %v936_v55 = vpop.xlane.xlu0 %935  ;;  %v942_v58 = vpop.xlane.xlu1 %941 }
 0x344   : > { %1789 = vpow2.f32 %v985_v50  ;;  %v967_v27 = vsub.f32 %v2440_v28, %v936_v55  ;;  %v970_v4 = vsub.f32 %v2442_v33, %v942_v58 }
 0x346   : > { %v983_v8 = vmul.f32 1.442695, %v967_v27  ;;  %v989_v19 = vmul.f32 1.442695, %v970_v4 }
 0x347   : > { %v940_v14 = vpop.xlane.xlu1 %939 }
 0x348   : > { %1791 = vpow2.f32 %v983_v8  ;;  %v969_v36 = vsub.f32 %v2447_v45, %v940_v14 }
 0x349   : > { %1793 = vpow2.f32 %v989_v19 }
 0x34a   : > { %v987_v23 = vmul.f32 1.442695, %v969_v36 }
 0x34c   : > { %1795 = vpow2.f32 %v987_v23 }
 0x34e   : > { %v2514_v35 = vpop.eup %1789 }
 0x34f   : > { %v954_v40 = vpop.xlane.xlu0 %953  ;;  %1017 = vadd.xlane.f32.xlu1 %v2514_v35 }
 0x350   : > { %v976_v63 = vsub.f32 %v2456_v59, %v954_v40  ;;  %v952_v46 = vpop.xlane.xlu1 %951 }
 0x351   : > { %v975_v28 = vsub.f32 %v2459_v7, %v952_v46 }
 0x352   : > { %v2519_v33 = vpop.eup %1791  ;;  %v1001_v47 = vmul.f32 1.442695, %v976_v63 }
 0x353   : > { %1015 = vadd.xlane.f32.xlu1 %v2519_v33  ;;  %v958_v48 = vpop.xlane.xlu0 %957  ;;  %v999_v45 = vmul.f32 1.442695, %v975_v28  ;;  %v2523_v52 = vpop.eup %1793 }
 0x354   : > { %1797 = vpow2.f32 %v1001_v47  ;;  %v978_v49 = vsub.f32 %v2466_v5, %v958_v48  ;;  %v944_v51 = vpop.xlane.xlu1 %943 }
 0x355   : > { %1799 = vpow2.f32 %v999_v45  ;;  %v971_v59 = vsub.f32 %v2469_v10, %v944_v51 }
 0x356   : > { %v1005_v54 = vmul.f32 1.442695, %v978_v49  ;;  %v2529_v61 = vpop.eup %1795 }
 0x357   : > { %1021 = vadd.xlane.f32.xlu1 %v2523_v52  ;;  %v956_v53 = vpop.xlane.xlu0 %955  ;;  %v991_v3 = vmul.f32 1.442695, %v971_v59 }
 0x358   : > { %v977_v56 = vsub.f32 %v2476_v16, %v956_v53  ;;  %v946_v57 = vpop.xlane.xlu1 %945  ;;  %1801 = vpow2.f32 %v1005_v54 }
 0x359   : > { %v972_v60 = vsub.f32 %v2479_v20, %v946_v57 }
 0x35a   : > { %v1003_v0 = vmul.f32 1.442695, %v977_v56 }
 0x35b   : > { %v993_v7 = vmul.f32 1.442695, %v972_v60  ;;  %1019 = vadd.xlane.f32.xlu1 %v2529_v61  ;;  %v962_v62 = vpop.xlane.xlu0 %961 }
 0x35c   : > { %v980_v1 = vsub.f32 %v2486_v29, %v962_v62  ;;  %v948_v2 = vpop.xlane.xlu1 %947 }
 0x35d   : > { %1803 = vpow2.f32 %v993_v7  ;;  %v973_v5 = vsub.f32 %v2489_v32, %v948_v2 }
 0x35e   : > { %v2534_v6 = vpop.eup %1797  ;;  %1805 = vpow2.f32 %v1003_v0  ;;  %v1009_v10 = vmul.f32 1.442695, %v980_v1 }
 0x35f   : > { %v960_v9 = vpop.xlane.xlu0 %959  ;;  %1033 = vadd.xlane.f32.xlu0 %v2534_v6  ;;  %1807 = vpow2.f32 %v991_v3  ;;  %v995_v13 = vmul.f32 1.442695, %v973_v5  ;;  %v2539_v16 = vpop.eup %1799 }
 0x360   : > { %v979_v11 = vsub.f32 %v2495_v38, %v960_v9  ;;  %v950_v12 = vpop.xlane.xlu1 %949  ;;  %1809 = vpow2.f32 %v1009_v10 }
 0x361   : > { %v974_v15 = vsub.f32 %v2498_v39, %v950_v12  ;;  %1811 = vpow2.f32 %v995_v13 }
 0x362   : > { %v1007_v18 = vmul.f32 1.442695, %v979_v11  ;;  %v2543_v24 = vpop.eup %1801 }
 0x363   : > { %1031 = vadd.xlane.f32.xlu0 %v2539_v16  ;;  %v964_v17 = vpop.xlane.xlu0 %963  ;;  %v997_v21 = vmul.f32 1.442695, %v974_v15 }
 0x364   : > { %v981_v20 = vsub.f32 %v2503_v22, %v964_v17  ;;  %1813 = vpow2.f32 %v1007_v18 }
 0x365   : > { %1815 = vpow2.f32 %v997_v21 }
 0x366   : > { %v1011_v29 = vmul.f32 1.442695, %v981_v20 }
 0x367   : > { %v2545_v25 = vpop.eup %1803  ;;  %1037 = vadd.xlane.f32.xlu0 %v2543_v24  ;;  %v966_v26 = vpop.xlane.xlu0 %965 }
 0x368   : > { %v982_v31 = vsub.f32 %v2507_v30, %v966_v26  ;;  %1025 = vadd.xlane.f32.xlu1 %v2545_v25  ;;  %v2550_v32 = vpop.eup %1805  ;;  %1817 = vpow2.f32 %v1011_v29 }
 0x369   : > { %v2552_v34 = vpop.eup %1807 }
 0x36a   : > { %v1013_v37 = vmul.f32 1.442695, %v982_v31  ;;  %v2556_v38 = vpop.eup %1809 }
 0x36b   : > { %1035 = vadd.xlane.f32.xlu0 %v2550_v32  ;;  %v2558_v39 = vpop.eup %1811 }
 0x36c   : > { %1023 = vadd.xlane.f32.xlu1 %v2552_v34  ;;  %1819 = vpow2.f32 %v1013_v37 }
 0x36e   : > { %v2562_v42 = vpop.eup %1813 }
 0x36f   : > { %1041 = vadd.xlane.f32.xlu0 %v2556_v38  ;;  %v2564_v43 = vpop.eup %1815 }
 0x370   : > { %1027 = vadd.xlane.f32.xlu1 %v2558_v39 }
 0x372   : > { %v2568_v22 = vpop.eup %1817 }
 0x373   : > { %1039 = vadd.xlane.f32.xlu0 %v2562_v42 }
 0x374   : > { %1029 = vadd.xlane.f32.xlu1 %v2564_v43 }
 0x376   : > { %v2571_v30 = vpop.eup %1819 }
 0x377   : > { %1043 = vadd.xlane.f32.xlu0 %v2568_v22 }
 0x37b   : > { %1045 = vadd.xlane.f32.xlu0 %v2571_v30 }
 0x3dc   : > { %v1018_v41 = vpop.xlane.xlu1 %1017 }
 0x3dd   : > { %1821 = vrcp.f32 %v1018_v41 }
 0x3e0   : > { %v1016_v44 = vpop.xlane.xlu1 %1015 }
 0x3e1   : > { %1823 = vrcp.f32 %v1016_v44 }
 0x3e4   : > { %v1022_v50 = vpop.xlane.xlu1 %1021 }
 0x3e5   : > { %1825 = vrcp.f32 %v1022_v50 }
 0x3e7   : > { %v1822_v58 = vpop.eup %1821 }
 0x3e8   : > { %v1020_v55 = vpop.xlane.xlu1 %1019  ;;  %v1064_v14 = vmul.f32 %v1822_v58, %v2514_v35 }
 0x3e9   : > { %1827 = vrcp.f32 %v1020_v55 }
 0x3eb   : > { %v1824_v27 = vpop.eup %1823 }
 0x3ec   : > { %v1034_v4 = vpop.xlane.xlu0 %1033  ;;  %v1063_v8 = vmul.f32 %v1824_v27, %v2519_v33 }
 0x3ed   : > { %1829 = vrcp.f32 %v1034_v4 }
 0x3ee   : > { %1490 = vmatprep.mubr.f32.mxu0 %v1063_v8 }
 0x3ef   : > { %1491 = vmatmul.mubr.f32.vlgmr.msra.gmra.mrb[32].mxu0 %v1064_v14  ;;  %v1826_v36 = vpop.eup %1825 }
 0x3f0   : > { %v1032_v19 = vpop.xlane.xlu0 %1031  ;;  %v1066_v28 = vmul.f32 %v1826_v36, %v2523_v52 }
 0x3f1   : > { %1831 = vrcp.f32 %v1032_v19 }
 0x3f3   : > { %v1828_v23 = vpop.eup %1827 }
 0x3f4   : > { %v1038_v40 = vpop.xlane.xlu0 %1037  ;;  %v1065_v63 = vmul.f32 %v1828_v23, %v2529_v61 }
 0x3f5   : > { %v1026_v46 = vpop.xlane.xlu1 %1025  ;;  %1833 = vrcp.f32 %v1038_v40 }
 0x3f6   : > { %1493 = vmatprep.mubr.f32.mxu0 %v1065_v63  ;;  %1835 = vrcp.f32 %v1026_v46 }
 0x3f7   : > { %1494 = vmatmul.mubr.f32.gmra.mrb[34].mxu0 %v1066_v28  ;;  %v1830_v47 = vpop.eup %1829 }
 0x3f8   : > { %v1036_v33 = vpop.xlane.xlu0 %1035  ;;  %v1072_v51 = vmul.f32 %v1830_v47, %v2534_v6 }
 0x3f9   : > { %1837 = vrcp.f32 %v1036_v33  ;;  %v1024_v35 = vpop.xlane.xlu1 %1023 }
 0x3fa   : > { %1839 = vrcp.f32 %v1024_v35 }
 0x3fb   : > { %v1832_v48 = vpop.eup %1831 }
 0x3fc   : > { %v1042_v45 = vpop.xlane.xlu0 %1041  ;;  %v1071_v49 = vmul.f32 %v1832_v48, %v2539_v16 }
 0x3fd   : > { %v1028_v53 = vpop.xlane.xlu1 %1027 }
 0x3fe   : > { %1841 = vrcp.f32 %v1028_v53  ;;  %1502 = vmatprep.mubr.f32.mxu1 %v1071_v49 }
 0x3ff   : > { %1503 = vmatmul.mubr.f32.vlgmr.msra.gmra.mrb[48].mxu1 %v1072_v51  ;;  %1843 = vrcp.f32 %v1042_v45  ;;  %v1834_v54 = vpop.eup %1833 }
 0x400   : > { %v1040_v52 = vpop.xlane.xlu0 %1039  ;;  %v1836_v57 = vpop.eup %1835  ;;  %v1074_v0 = vmul.f32 %v1834_v54, %v2543_v24 }
 0x401   : > { %1845 = vrcp.f32 %v1040_v52  ;;  %v1030_v56 = vpop.xlane.xlu1 %1029  ;;  %v1068_v1 = vmul.f32 %v1836_v57, %v2545_v25 }
 0x402   : > { %1847 = vrcp.f32 %v1030_v56 }
 0x403   : > { %v1838_v59 = vpop.eup %1837 }
 0x404   : > { %v1840_v60 = vpop.eup %1839  ;;  %v1044_v61 = vpop.xlane.xlu0 %1043  ;;  %v1073_v7 = vmul.f32 %v1838_v59, %v2550_v32 }
 0x405   : > { %1849 = vrcp.f32 %v1044_v61  ;;  %v1067_v62 = vmul.f32 %v1840_v60, %v2552_v34 }
 0x406   : > { %1505 = vmatprep.mubr.f32.mxu1 %v1073_v7 }
 0x407   : > { %1496 = vmatprep.mubr.f32.mxu0 %v1067_v62  ;;  %1506 = vmatmul.mubr.f32.gmra.mrb[50].mxu1 %v1074_v0 }
 0x408   : > { %v1842_v2 = vpop.eup %1841  ;;  %v1046_v3 = vpop.xlane.xlu0 %1045  ;;  %1497 = vmatmul.mubr.f32.gmra.mrb[36].mxu0 %v1068_v1 }
 0x409   : > { %1851 = vrcp.f32 %v1046_v3  ;;  %v1069_v5 = vmul.f32 %v1842_v2, %v2558_v39  ;;  %v1844_v6 = vpop.eup %1843 }
 0x40a   : > { %v1076_v13 = vmul.f32 %v1844_v6, %v2556_v38 }
 0x40b   : > { %v1846_v9 = vpop.eup %1845  ;;  %1499 = vmatprep.mubr.f32.mxu0 %v1069_v5 }
 0x40c   : > { %v1848_v10 = vpop.eup %1847  ;;  %v1075_v11 = vmul.f32 %v1846_v9, %v2562_v42 }
 0x40d   : > { %v1070_v12 = vmul.f32 %v1848_v10, %v2564_v43 }
 0x40e   : > { %1508 = vmatprep.mubr.f32.mxu1 %v1075_v11 }
 0x40f   : > { %v1850_v15 = vpop.eup %1849  ;;  %1500 = vmatmul.mubr.f32.gmra.mrb[38].mxu0 %v1070_v12  ;;  %1509 = vmatmul.mubr.f32.gmra.mrb[52].mxu1 %v1076_v13 }
 0x410   : > { %v1077_v16 = vmul.f32 %v1850_v15, %v2568_v22 }
 0x412   : > { %1511 = vmatprep.mubr.f32.mxu1 %v1077_v16 }
 0x413   : > { %v1852_v17 = vpop.eup %1851 }
 0x414   : > { %v1078_v18 = vmul.f32 %v1852_v17, %v2571_v30 }
 0x416   : > { %1512 = vmatmul.mubr.f32.gmra.mrb[54].mxu1 %v1078_v18 }
 0x4c2   : > { %v1492_v20 = vpop.f32.mrb[32].mxu0 }
 0x4c3   : > { %1225 = vst.msk [vmem:[%s2594_s4 + $0x8] sm:$0xff] %vm658_vm0, %v1492_v20  ;;  %v1145_v21 = vpop.f32.mrb[33].mxu0 }
 0x4c4   : > { %1224 = vst.msk [vmem:[%s2594_s4] sm:$0xff] %vm658_vm0, %v1145_v21 }
 0x4ca   : > { %v1495_v24 = vpop.f32.mrb[34].mxu0 }
 0x4cb   : > { %1227 = vst.msk [vmem:[%s2594_s4 + $0x18] sm:$0xff] %vm658_vm0, %v1495_v24  ;;  %v1155_v25 = vpop.f32.mrb[35].mxu0 }
 0x4cc   : > { %1226 = vst.msk [vmem:[%s2594_s4 + $0x10] sm:$0xff] %vm658_vm0, %v1155_v25 }
 0x4d2   : > { %v1504_v26 = vpop.f32.mrb[48].mxu1 }
 0x4d3   : > { %1233 = vst.msk [vmem:[%s2594_s4 + $0x48] sm:$0xff] %vm658_vm0, %v1504_v26  ;;  %v1185_v29 = vpop.f32.mrb[49].mxu1 }
 0x4d4   : > { %1232 = vst.msk [vmem:[%s2594_s4 + $0x40] sm:$0xff] %vm658_vm0, %v1185_v29 }
 0x4da   : > { %v1507_v31 = vpop.f32.mrb[50].mxu1 }
 0x4db   : > { %1235 = vst.msk [vmem:[%s2594_s4 + $0x58] sm:$0xff] %vm658_vm0, %v1507_v31  ;;  %v1498_v32 = vpop.f32.mrb[36].mxu0  ;;  %v1195_v34 = vpop.f32.mrb[51].mxu1 }
 0x4dc   : > { %1229 = vst.msk [vmem:[%s2594_s4 + $0x28] sm:$0xff] %vm658_vm0, %v1498_v32  ;;  %1234 = vst.msk [vmem:[%s2594_s4 + $0x50] sm:$0xff] %vm658_vm0, %v1195_v34  ;;  %v1165_v37 = vpop.f32.mrb[37].mxu0 }
 0x4dd   : > { %1228 = vst.msk [vmem:[%s2594_s4 + $0x20] sm:$0xff] %vm658_vm0, %v1165_v37 }
 0x4e2   : > { %v1501_v38 = vpop.f32.mrb[38].mxu0  ;;  %v1510_v39 = vpop.f32.mrb[52].mxu1 }
 0x4e3   : > { %1231 = vst.msk [vmem:[%s2594_s4 + $0x38] sm:$0xff] %vm658_vm0, %v1501_v38  ;;  %1237 = vst.msk [vmem:[%s2594_s4 + $0x68] sm:$0xff] %vm658_vm0, %v1510_v39  ;;  %v1175_v42 = vpop.f32.mrb[39].mxu0  ;;  %v1205_v43 = vpop.f32.mrb[53].mxu1 }
 0x4e4   : > { %1230 = vst.msk [vmem:[%s2594_s4 + $0x30] sm:$0xff] %vm658_vm0, %v1175_v42  ;;  %1236 = vst.msk [vmem:[%s2594_s4 + $0x60] sm:$0xff] %vm658_vm0, %v1205_v43 }
 0x4e9   : > { %v1513_v22 = vpop.f32.mrb[54].mxu1 }
 0x4ea   : > { %1239 = vst.msk [vmem:[%s2594_s4 + $0x78] sm:$0xff] %vm658_vm0, %v1513_v22  ;;  %v1215_v30 = vpop.f32.mrb[55].mxu1 }
 0x4eb   : > { %1238 = vst.msk [vmem:[%s2594_s4 + $0x70] sm:$0xff] %vm658_vm0, %v1215_v30 }
 0x4ec PF: > { %s12_s9 = sadd.s32 1, %s1859_s9  }
 0x4ed   : > { %p9_p4 = scmp.ge.s32.totalorder %s12_s9, 4  }
 0x4ef   :  { %11 = sbr.rel (!%p9_p4) target bundleno = 1 (0x1), region = 58 }

</bundles_post_ra>
